<compile_context>
chip_gen: v6e
topology: v6e:2x2x1
jax: 0.10.0
libtpu: 0.0.40
codegen_flags: <defaults>
</compile_context>

<pallas_src>
import functools

import jax
import jax.numpy as jnp
from jax.experimental import pallas as pl
from jax.experimental.pallas import tpu as pltpu

_LANE = 128
_SUBLANE = 8


def _round_up(x, m):
    return (x + m - 1) // m * m


def _cdiv(a, b):
    return (a + b - 1) // b


# --------------------------------------------------------------------------- #
# Kernel: one batch tile through all three layers, weights resident in VMEM.   #
# --------------------------------------------------------------------------- #
def ffn_kernel(x_ref, w1_ref, b1_ref, w2_ref, b2_ref, w3_ref, b3_ref, o_ref):
    # Cast activations to bf16 at the MXU inputs *inside* the kernel (VPU work,
    # hidden under the MXU); accumulate in f32; bias/ReLU/sigmoid math in f32.
    x = x_ref[...].astype(jnp.bfloat16)
    h1 = jnp.dot(x, w1_ref[...], preferred_element_type=jnp.float32)
    h1 = jnp.maximum(h1 + b1_ref[...], 0.0)
    h2 = jnp.dot(h1.astype(jnp.bfloat16), w2_ref[...],
                 preferred_element_type=jnp.float32)
    h2 = jnp.maximum(h2 + b2_ref[...], 0.0)
    z = jnp.dot(h2.astype(jnp.bfloat16), w3_ref[...],
                preferred_element_type=jnp.float32) + b3_ref[...]
    o_ref[...] = jax.nn.sigmoid(z).astype(o_ref.dtype)


# --------------------------------------------------------------------------- #
# One-time parameter prep (NOT per-call): bf16 weights, lane-padded dims.      #
# --------------------------------------------------------------------------- #
def prepare_params(w1, b1, w2, b2, w3, b3):
    """Cast weights to bf16 and zero-pad every matmul dim to a multiple of 128
    once, so the kernel reads lane-dense bf16 weights straight from HBM with no
    per-call cast/pad traffic.  Zero padding is exact: padded hidden units give
    relu(0 + 0) = 0 and padded weight rows contribute 0 downstream."""
    D_in, H1 = w1.shape
    H2 = w2.shape[1]
    D_out = w3.shape[1]
    D_in_p = _round_up(D_in, _LANE)
    H1_p = _round_up(H1, _LANE)
    H2_p = _round_up(H2, _LANE)
    D_out_p = _round_up(D_out, _LANE)

    def pad_w(w, rows, cols):
        return jnp.pad(w.astype(jnp.bfloat16),
                       ((0, rows - w.shape[0]), (0, cols - w.shape[1])))

    def pad_b(b, cols):
        b = b.reshape(1, -1).astype(jnp.float32)
        return jnp.pad(b, ((0, 0), (0, cols - b.shape[1])))

    params = (
        pad_w(w1, D_in_p, H1_p), pad_b(b1, H1_p),
        pad_w(w2, H1_p, H2_p), pad_b(b2, H2_p),
        pad_w(w3, H2_p, D_out_p), pad_b(b3, D_out_p),
    )
    return params, D_out


# --------------------------------------------------------------------------- #
# Jitted forward                                                               #
# --------------------------------------------------------------------------- #
@functools.partial(jax.jit,
                   static_argnames=("d_out", "tm", "single_buffer_weights"))
def ffn_forward(x, w1, b1, w2, b2, w3, b3, *, d_out, tm=256,
                single_buffer_weights=True):
    B, D_in = x.shape
    D_in_p, H1_p = w1.shape
    H2_p = w2.shape[1]
    D_out_p = w3.shape[1]

    # Batch tiling: minimize padding waste; force grid >= 2 when B allows so
    # the "parallel" batch axis actually splits across both v7x TensorCores.
    min_steps = 2 if B >= 2 * _SUBLANE else 1
    steps = max(_cdiv(B, tm), min_steps)
    tm_eff = _round_up(_cdiv(B, steps), _SUBLANE)
    B_p = steps * tm_eff

    # Pad x rows to the tile grid and columns to the (pre-padded) D_in.
    # No-op when B and D_in are already aligned.
    x_p = x
    if B_p != B or D_in_p != D_in:
        x_p = jnp.pad(x_p, ((0, B_p - B), (0, D_in_p - D_in)))

    # Weight / bias specs have a constant index_map -> double-buffering buys
    # zero overlap; single-buffer them to halve their VMEM footprint.
    def const_spec(shape):
        if single_buffer_weights:
            return pl.BlockSpec(shape, lambda i: (0, 0),
                                pipeline_mode=pl.Buffered(1))
        return pl.BlockSpec(shape, lambda i: (0, 0))

    # VMEM budget from actual buffer sizes (+50% slack), not a magic constant.
    # Capped at 100 MiB (v5e/v6e physical = 128 MiB); on v7x (64 MiB) the
    # all-weights-resident design only works while this stays < ~48 MiB.
    w_bufs = 1 if single_buffer_weights else 2
    itemsize_x = jnp.dtype(x.dtype).itemsize
    need = (
        2 * tm_eff * D_in_p * itemsize_x                                  # x tile (2-buf)
        + 2 * tm_eff * D_out_p * 4                                        # out tile (2-buf)
        + w_bufs * 2 * (D_in_p * H1_p + H1_p * H2_p + H2_p * D_out_p)     # bf16 weights
        + w_bufs * 4 * (H1_p + H2_p + D_out_p)                            # f32 biases
        + tm_eff * (2 * D_in_p + 4 * (H1_p + H2_p + D_out_p))             # in-kernel temps
    )
    vmem_limit = min(max(int(need * 1.5) + (2 << 20), 16 << 20), 100 << 20)

    flops = 2 * B_p * (D_in_p * H1_p + H1_p * H2_p + H2_p * D_out_p)
    bytes_accessed = (
        B_p * D_in_p * itemsize_x
        + 2 * (D_in_p * H1_p + H1_p * H2_p + H2_p * D_out_p)
        + 4 * (H1_p + H2_p + D_out_p)
        + B_p * D_out_p * 4
    )
    cost = pl.CostEstimate(flops=flops, transcendentals=B_p * D_out_p,
                           bytes_accessed=bytes_accessed)

    out_p = pl.pallas_call(
        ffn_kernel,
        out_shape=jax.ShapeDtypeStruct((B_p, D_out_p), jnp.float32),
        grid_spec=pltpu.PrefetchScalarGridSpec(
            num_scalar_prefetch=0,
            grid=(steps,),
            in_specs=[
                pl.BlockSpec((tm_eff, D_in_p), lambda i: (i, 0)),
                const_spec((D_in_p, H1_p)),
                const_spec((1, H1_p)),
                const_spec((H1_p, H2_p)),
                const_spec((1, H2_p)),
                const_spec((H2_p, D_out_p)),
                const_spec((1, D_out_p)),
            ],
            out_specs=pl.BlockSpec((tm_eff, D_out_p), lambda i: (i, 0)),
        ),
        compiler_params=pltpu.CompilerParams(
            dimension_semantics=("parallel",),
            vmem_limit_bytes=vmem_limit,
        ),
        cost_estimate=cost,
    )(x_p, w1, b1, w2, b2, w3, b3)

    return out_p[:B, :d_out]


def run_ffn(x, params, d_out, *, tm=256):
    """Invoke the jitted forward; fall back to default (double-buffered) weight
    specs if this jax build rejects pipeline_mode=pl.Buffered(1) on pallas_call."""
    try:
        return ffn_forward(x, *params, d_out=d_out, tm=tm,
                           single_buffer_weights=True)
    except Exception:  # pragma: no cover - older jax without per-operand buffering
        return ffn_forward(x, *params, d_out=d_out, tm=tm,
                           single_buffer_weights=False)


# --------------------------------------------------------------------------- #
# Init + references                                                            #
# --------------------------------------------------------------------------- #
def init_linear(key, in_features, out_features, dtype=jnp.float32):
    """Deterministic init with nn.Linear-style bounds; W stored (in, out),
    bias stored (1, out) (broadcast-equivalent to PyTorch's (out,))."""
    kw, kb = jax.random.split(key)
    bound = 1.0 / jnp.sqrt(in_features)
    w = jax.random.uniform(kw, (in_features, out_features), dtype, -bound, bound)
    b = jax.random.uniform(kb, (1, out_features), dtype, -bound, bound)
    return w, b


def reference_forward_bf16(x, w1, b1, w2, b2, w3, b3):
    """Reference using the same bf16-MXU-input / f32-accumulate convention."""
    bf = jnp.bfloat16
    h1 = jnp.maximum(jnp.dot(x.astype(bf), w1.astype(bf),
                             preferred_element_type=jnp.float32) + b1, 0.0)
    h2 = jnp.maximum(jnp.dot(h1.astype(bf), w2.astype(bf),
                             preferred_element_type=jnp.float32) + b2, 0.0)
    z = jnp.dot(h2.astype(bf), w3.astype(bf),
                preferred_element_type=jnp.float32) + b3
    return jax.nn.sigmoid(z)


def reference_forward_f32(x, w1, b1, w2, b2, w3, b3):
    h1 = jnp.maximum(x @ w1 + b1, 0.0)
    h2 = jnp.maximum(h1 @ w2 + b2, 0.0)
    return jax.nn.sigmoid(h2 @ w3 + b3)


if __name__ == "__main__":
    # Small FFN consistent with the module structure (input -> h1 -> h2 -> out).
    # Case 1: lane-aligned dims; batch chosen so the grid splits 2 ways.
    batch, input_size, hidden_sizes, output_size = 64, 256, [128, 128], 128

    key = jax.random.PRNGKey(0)
    kx, k1, k2, k3 = jax.random.split(key, 4)
    x = jax.random.normal(kx, (batch, input_size), jnp.float32)
    w1, b1 = init_linear(k1, input_size, hidden_sizes[0])
    w2, b2 = init_linear(k2, hidden_sizes[0], hidden_sizes[1])
    w3, b3 = init_linear(k3, hidden_sizes[1], output_size)

    params, d_out = prepare_params(w1, b1, w2, b2, w3, b3)   # one-time prep
    out = jax.block_until_ready(run_ffn(x, params, d_out, tm=256))
    assert out.shape == (batch, output_size)
    assert jnp.allclose(out, reference_forward_bf16(x, w1, b1, w2, b2, w3, b3),
                        atol=2e-3, rtol=2e-3)
    assert jnp.allclose(out, reference_forward_f32(x, w1, b1, w2, b2, w3, b3),
                        atol=5e-2, rtol=5e-2)

    # Case 2: non-128-aligned dims and odd batch -> exercises the padding path.
    batch2, in2, hid2, out2 = 37, 200, [96, 160], 40
    kx2, k4, k5, k6 = jax.random.split(jax.random.PRNGKey(1), 4)
    x2 = jax.random.normal(kx2, (batch2, in2), jnp.float32)
    w1b, b1b = init_linear(k4, in2, hid2[0])
    w2b, b2b = init_linear(k5, hid2[0], hid2[1])
    w3b, b3b = init_linear(k6, hid2[1], out2)
    params2, d_out2 = prepare_params(w1b, b1b, w2b, b2b, w3b, b3b)
    y2 = jax.block_until_ready(run_ffn(x2, params2, d_out2, tm=256))
    assert y2.shape == (batch2, out2)
    assert jnp.allclose(y2,
                        reference_forward_bf16(x2, w1b, b1b, w2b, b2b, w3b, b3b),
                        atol=2e-3, rtol=2e-3)

    print("KERNEL_OK")
</pallas_src>

<mosaic_0001>
module attributes {stable_mosaic.version = 11 : i64} {
  func.func @ffn_kernel(%arg0: i32, %arg1: memref<32x256xf32, #tpu.memory_space<vmem>>, %arg2: memref<256x128xbf16, #tpu.memory_space<vmem>>, %arg3: memref<1x128xf32, #tpu.memory_space<vmem>>, %arg4: memref<128x128xbf16, #tpu.memory_space<vmem>>, %arg5: memref<1x128xf32, #tpu.memory_space<vmem>>, %arg6: memref<128x128xbf16, #tpu.memory_space<vmem>>, %arg7: memref<1x128xf32, #tpu.memory_space<vmem>>, %arg8: memref<32x128xf32, #tpu.memory_space<vmem>>) attributes {dimension_semantics = [#tpu.dimension_semantics<parallel>], iteration_bounds = array<i64: 2>, scalar_prefetch = 0 : i64, scratch_operands = 0 : i64, tpu.core_type = #tpu.core_type<tc>, window_params = [{transform_indices = @transform_0, window_bounds = array<i64: 32, 256>}, {pipeline_mode = #tpu.pipeline_mode<synchronous>, transform_indices = @transform_1, window_bounds = array<i64: 256, 128>}, {pipeline_mode = #tpu.pipeline_mode<synchronous>, transform_indices = @transform_2, window_bounds = array<i64: 1, 128>}, {pipeline_mode = #tpu.pipeline_mode<synchronous>, transform_indices = @transform_3, window_bounds = array<i64: 128, 128>}, {pipeline_mode = #tpu.pipeline_mode<synchronous>, transform_indices = @transform_4, window_bounds = array<i64: 1, 128>}, {pipeline_mode = #tpu.pipeline_mode<synchronous>, transform_indices = @transform_5, window_bounds = array<i64: 128, 128>}, {pipeline_mode = #tpu.pipeline_mode<synchronous>, transform_indices = @transform_6, window_bounds = array<i64: 1, 128>}, {transform_indices = @transform_7, window_bounds = array<i64: 32, 128>}]} {
    %c0 = arith.constant 0 : index
    %c0_0 = arith.constant 0 : index
    %0 = vector.load %arg1[%c0, %c0_0] : memref<32x256xf32, #tpu.memory_space<vmem>>, vector<32x256xf32>
    %1 = arith.truncf %0 : vector<32x256xf32> to vector<32x256xbf16>
    %c0_1 = arith.constant 0 : index
    %c0_2 = arith.constant 0 : index
    %2 = vector.load %arg2[%c0_1, %c0_2] : memref<256x128xbf16, #tpu.memory_space<vmem>>, vector<256x128xbf16>
    %cst = arith.constant dense<0.000000e+00> : vector<32x128xf32>
    %3 = tpu.matmul %1, %2, %cst {dimension_numbers = #tpu.dot_dimension_numbers<[1], [0], [0], [1], [0, 0, 1, 1], [], []>} : vector<32x256xbf16>, vector<256x128xbf16>, vector<32x128xf32> -> vector<32x128xf32>
    %c0_3 = arith.constant 0 : index
    %c0_4 = arith.constant 0 : index
    %4 = vector.load %arg3[%c0_3, %c0_4] : memref<1x128xf32, #tpu.memory_space<vmem>>, vector<1x128xf32>
    %5 = vector.broadcast %4 : vector<1x128xf32> to vector<32x128xf32>
    %6 = arith.addf %3, %5 : vector<32x128xf32>
    %cst_5 = arith.constant 0.000000e+00 : f32
    %7 = vector.broadcast %cst_5 : f32 to vector<32x128xf32>
    %8 = arith.maximumf %6, %7 : vector<32x128xf32>
    %9 = arith.truncf %8 : vector<32x128xf32> to vector<32x128xbf16>
    %c0_6 = arith.constant 0 : index
    %c0_7 = arith.constant 0 : index
    %10 = vector.load %arg4[%c0_6, %c0_7] : memref<128x128xbf16, #tpu.memory_space<vmem>>, vector<128x128xbf16>
    %cst_8 = arith.constant dense<0.000000e+00> : vector<32x128xf32>
    %11 = tpu.matmul %9, %10, %cst_8 {dimension_numbers = #tpu.dot_dimension_numbers<[1], [0], [0], [1], [0, 0, 1, 1], [], []>} : vector<32x128xbf16>, vector<128x128xbf16>, vector<32x128xf32> -> vector<32x128xf32>
    %c0_9 = arith.constant 0 : index
    %c0_10 = arith.constant 0 : index
    %12 = vector.load %arg5[%c0_9, %c0_10] : memref<1x128xf32, #tpu.memory_space<vmem>>, vector<1x128xf32>
    %13 = vector.broadcast %12 : vector<1x128xf32> to vector<32x128xf32>
    %14 = arith.addf %11, %13 : vector<32x128xf32>
    %cst_11 = arith.constant 0.000000e+00 : f32
    %15 = vector.broadcast %cst_11 : f32 to vector<32x128xf32>
    %16 = arith.maximumf %14, %15 : vector<32x128xf32>
    %17 = arith.truncf %16 : vector<32x128xf32> to vector<32x128xbf16>
    %c0_12 = arith.constant 0 : index
    %c0_13 = arith.constant 0 : index
    %18 = vector.load %arg6[%c0_12, %c0_13] : memref<128x128xbf16, #tpu.memory_space<vmem>>, vector<128x128xbf16>
    %cst_14 = arith.constant dense<0.000000e+00> : vector<32x128xf32>
    %19 = tpu.matmul %17, %18, %cst_14 {dimension_numbers = #tpu.dot_dimension_numbers<[1], [0], [0], [1], [0, 0, 1, 1], [], []>} : vector<32x128xbf16>, vector<128x128xbf16>, vector<32x128xf32> -> vector<32x128xf32>
    %c0_15 = arith.constant 0 : index
    %c0_16 = arith.constant 0 : index
    %20 = vector.load %arg7[%c0_15, %c0_16] : memref<1x128xf32, #tpu.memory_space<vmem>>, vector<1x128xf32>
    %21 = vector.broadcast %20 : vector<1x128xf32> to vector<32x128xf32>
    %22 = arith.addf %19, %21 : vector<32x128xf32>
    %23 = arith.negf %22 : vector<32x128xf32>
    %24 = math.exp %23 : vector<32x128xf32>
    %cst_17 = arith.constant 1.000000e+00 : f32
    %25 = vector.broadcast %cst_17 : f32 to vector<32x128xf32>
    %26 = arith.addf %25, %24 : vector<32x128xf32>
    %27 = arith.divf %25, %26 : vector<32x128xf32>
    %c0_18 = arith.constant 0 : index
    %c0_19 = arith.constant 0 : index
    %28 = vector.load %arg8[%c0_18, %c0_19] : memref<32x128xf32, #tpu.memory_space<vmem>>, vector<32x128xf32>
    tpu.vector_store %arg8[%c0_18, %c0_19], %27 {strides = array<i32>} : memref<32x128xf32, #tpu.memory_space<vmem>>, vector<32x128xf32>,
    return
  }
  func.func @transform_0(%arg0: i32) -> (i32, i32) {
    %c0_i32 = arith.constant 0 : i32
    %c0_i32_0 = arith.constant 0 : i32
    return %arg0, %c0_i32 : i32, i32
  }
  func.func @transform_1(%arg0: i32) -> (i32, i32) {
    %c0_i32 = arith.constant 0 : i32
    %c0_i32_0 = arith.constant 0 : i32
    %c0_i32_1 = arith.constant 0 : i32
    return %c0_i32, %c0_i32_0 : i32, i32
  }
  func.func @transform_2(%arg0: i32) -> (i32, i32) {
    %c0_i32 = arith.constant 0 : i32
    %c0_i32_0 = arith.constant 0 : i32
    %c0_i32_1 = arith.constant 0 : i32
    return %c0_i32, %c0_i32_0 : i32, i32
  }
  func.func @transform_3(%arg0: i32) -> (i32, i32) {
    %c0_i32 = arith.constant 0 : i32
    %c0_i32_0 = arith.constant 0 : i32
    %c0_i32_1 = arith.constant 0 : i32
    return %c0_i32, %c0_i32_0 : i32, i32
  }
  func.func @transform_4(%arg0: i32) -> (i32, i32) {
    %c0_i32 = arith.constant 0 : i32
    %c0_i32_0 = arith.constant 0 : i32
    %c0_i32_1 = arith.constant 0 : i32
    return %c0_i32, %c0_i32_0 : i32, i32
  }
  func.func @transform_5(%arg0: i32) -> (i32, i32) {
    %c0_i32 = arith.constant 0 : i32
    %c0_i32_0 = arith.constant 0 : i32
    %c0_i32_1 = arith.constant 0 : i32
    return %c0_i32, %c0_i32_0 : i32, i32
  }
  func.func @transform_6(%arg0: i32) -> (i32, i32) {
    %c0_i32 = arith.constant 0 : i32
    %c0_i32_0 = arith.constant 0 : i32
    %c0_i32_1 = arith.constant 0 : i32
    return %c0_i32, %c0_i32_0 : i32, i32
  }
  func.func @transform_7(%arg0: i32) -> (i32, i32) {
    %c0_i32 = arith.constant 0 : i32
    %c0_i32_0 = arith.constant 0 : i32
    return %arg0, %c0_i32 : i32, i32
  }
}

module attributes {stable_mosaic.version = 11 : i64} {
  func.func @ffn_kernel(%arg0: i32, %arg1: memref<32x256xf32, #tpu.memory_space<vmem>>, %arg2: memref<256x128xbf16, #tpu.memory_space<vmem>>, %arg3: memref<1x128xf32, #tpu.memory_space<vmem>>, %arg4: memref<128x128xbf16, #tpu.memory_space<vmem>>, %arg5: memref<1x128xf32, #tpu.memory_space<vmem>>, %arg6: memref<128x128xbf16, #tpu.memory_space<vmem>>, %arg7: memref<1x128xf32, #tpu.memory_space<vmem>>, %arg8: memref<32x128xf32, #tpu.memory_space<vmem>>) attributes {dimension_semantics = [#tpu.dimension_semantics<parallel>], iteration_bounds = array<i64: 2>, scalar_prefetch = 0 : i64, scratch_operands = 0 : i64, tpu.core_type = #tpu.core_type<tc>, window_params = [{transform_indices = @transform_0, window_bounds = array<i64: 32, 256>}, {pipeline_mode = #tpu.pipeline_mode<synchronous>, transform_indices = @transform_1, window_bounds = array<i64: 256, 128>}, {pipeline_mode = #tpu.pipeline_mode<synchronous>, transform_indices = @transform_2, window_bounds = array<i64: 1, 128>}, {pipeline_mode = #tpu.pipeline_mode<synchronous>, transform_indices = @transform_3, window_bounds = array<i64: 128, 128>}, {pipeline_mode = #tpu.pipeline_mode<synchronous>, transform_indices = @transform_4, window_bounds = array<i64: 1, 128>}, {pipeline_mode = #tpu.pipeline_mode<synchronous>, transform_indices = @transform_5, window_bounds = array<i64: 128, 128>}, {pipeline_mode = #tpu.pipeline_mode<synchronous>, transform_indices = @transform_6, window_bounds = array<i64: 1, 128>}, {transform_indices = @transform_7, window_bounds = array<i64: 32, 128>}]} {
    %c0 = arith.constant 0 : index
    %c0_0 = arith.constant 0 : index
    %0 = vector.load %arg1[%c0, %c0_0] : memref<32x256xf32, #tpu.memory_space<vmem>>, vector<32x256xf32>
    %1 = arith.truncf %0 : vector<32x256xf32> to vector<32x256xbf16>
    %c0_1 = arith.constant 0 : index
    %c0_2 = arith.constant 0 : index
    %2 = vector.load %arg2[%c0_1, %c0_2] : memref<256x128xbf16, #tpu.memory_space<vmem>>, vector<256x128xbf16>
    %cst = arith.constant dense<0.000000e+00> : vector<32x128xf32>
    %3 = tpu.matmul %1, %2, %cst {dimension_numbers = #tpu.dot_dimension_numbers<[1], [0], [0], [1], [0, 0, 1, 1], [], []>} : vector<32x256xbf16>, vector<256x128xbf16>, vector<32x128xf32> -> vector<32x128xf32>
    %c0_3 = arith.constant 0 : index
    %c0_4 = arith.constant 0 : index
    %4 = vector.load %arg3[%c0_3, %c0_4] : memref<1x128xf32, #tpu.memory_space<vmem>>, vector<1x128xf32>
    %5 = vector.broadcast %4 : vector<1x128xf32> to vector<32x128xf32>
    %6 = arith.addf %3, %5 : vector<32x128xf32>
    %cst_5 = arith.constant 0.000000e+00 : f32
    %7 = vector.broadcast %cst_5 : f32 to vector<32x128xf32>
    %8 = arith.maximumf %6, %7 : vector<32x128xf32>
    %9 = arith.truncf %8 : vector<32x128xf32> to vector<32x128xbf16>
    %c0_6 = arith.constant 0 : index
    %c0_7 = arith.constant 0 : index
    %10 = vector.load %arg4[%c0_6, %c0_7] : memref<128x128xbf16, #tpu.memory_space<vmem>>, vector<128x128xbf16>
    %cst_8 = arith.constant dense<0.000000e+00> : vector<32x128xf32>
    %11 = tpu.matmul %9, %10, %cst_8 {dimension_numbers = #tpu.dot_dimension_numbers<[1], [0], [0], [1], [0, 0, 1, 1], [], []>} : vector<32x128xbf16>, vector<128x128xbf16>, vector<32x128xf32> -> vector<32x128xf32>
    %c0_9 = arith.constant 0 : index
    %c0_10 = arith.constant 0 : index
    %12 = vector.load %arg5[%c0_9, %c0_10] : memref<1x128xf32, #tpu.memory_space<vmem>>, vector<1x128xf32>
    %13 = vector.broadcast %12 : vector<1x128xf32> to vector<32x128xf32>
    %14 = arith.addf %11, %13 : vector<32x128xf32>
    %cst_11 = arith.constant 0.000000e+00 : f32
    %15 = vector.broadcast %cst_11 : f32 to vector<32x128xf32>
    %16 = arith.maximumf %14, %15 : vector<32x128xf32>
    %17 = arith.truncf %16 : vector<32x128xf32> to vector<32x128xbf16>
    %c0_12 = arith.constant 0 : index
    %c0_13 = arith.constant 0 : index
    %18 = vector.load %arg6[%c0_12, %c0_13] : memref<128x128xbf16, #tpu.memory_space<vmem>>, vector<128x128xbf16>
    %cst_14 = arith.constant dense<0.000000e+00> : vector<32x128xf32>
    %19 = tpu.matmul %17, %18, %cst_14 {dimension_numbers = #tpu.dot_dimension_numbers<[1], [0], [0], [1], [0, 0, 1, 1], [], []>} : vector<32x128xbf16>, vector<128x128xbf16>, vector<32x128xf32> -> vector<32x128xf32>
    %c0_15 = arith.constant 0 : index
    %c0_16 = arith.constant 0 : index
    %20 = vector.load %arg7[%c0_15, %c0_16] : memref<1x128xf32, #tpu.memory_space<vmem>>, vector<1x128xf32>
    %21 = vector.broadcast %20 : vector<1x128xf32> to vector<32x128xf32>
    %22 = arith.addf %19, %21 : vector<32x128xf32>
    %23 = arith.negf %22 : vector<32x128xf32>
    %24 = math.exp %23 : vector<32x128xf32>
    %cst_17 = arith.constant 1.000000e+00 : f32
    %25 = vector.broadcast %cst_17 : f32 to vector<32x128xf32>
    %26 = arith.addf %25, %24 : vector<32x128xf32>
    %27 = arith.divf %25, %26 : vector<32x128xf32>
    %c0_18 = arith.constant 0 : index
    %c0_19 = arith.constant 0 : index
    %28 = vector.load %arg8[%c0_18, %c0_19] : memref<32x128xf32, #tpu.memory_space<vmem>>, vector<32x128xf32>
    tpu.vector_store %arg8[%c0_18, %c0_19], %27 {strides = array<i32>} : memref<32x128xf32, #tpu.memory_space<vmem>>, vector<32x128xf32>,
    return
  }
  func.func @transform_0(%arg0: i32) -> (i32, i32) {
    %c0_i32 = arith.constant 0 : i32
    %c0_i32_0 = arith.constant 0 : i32
    return %arg0, %c0_i32 : i32, i32
  }
  func.func @transform_1(%arg0: i32) -> (i32, i32) {
    %c0_i32 = arith.constant 0 : i32
    %c0_i32_0 = arith.constant 0 : i32
    %c0_i32_1 = arith.constant 0 : i32
    return %c0_i32, %c0_i32_0 : i32, i32
  }
  func.func @transform_2(%arg0: i32) -> (i32, i32) {
    %c0_i32 = arith.constant 0 : i32
    %c0_i32_0 = arith.constant 0 : i32
    %c0_i32_1 = arith.constant 0 : i32
    return %c0_i32, %c0_i32_0 : i32, i32
  }
  func.func @transform_3(%arg0: i32) -> (i32, i32) {
    %c0_i32 = arith.constant 0 : i32
    %c0_i32_0 = arith.constant 0 : i32
    %c0_i32_1 = arith.constant 0 : i32
    return %c0_i32, %c0_i32_0 : i32, i32
  }
  func.func @transform_4(%arg0: i32) -> (i32, i32) {
    %c0_i32 = arith.constant 0 : i32
    %c0_i32_0 = arith.constant 0 : i32
    %c0_i32_1 = arith.constant 0 : i32
    return %c0_i32, %c0_i32_0 : i32, i32
  }
  func.func @transform_5(%arg0: i32) -> (i32, i32) {
    %c0_i32 = arith.constant 0 : i32
    %c0_i32_0 = arith.constant 0 : i32
    %c0_i32_1 = arith.constant 0 : i32
    return %c0_i32, %c0_i32_0 : i32, i32
  }
  func.func @transform_6(%arg0: i32) -> (i32, i32) {
    %c0_i32 = arith.constant 0 : i32
    %c0_i32_0 = arith.constant 0 : i32
    %c0_i32_1 = arith.constant 0 : i32
    return %c0_i32, %c0_i32_0 : i32, i32
  }
  func.func @transform_7(%arg0: i32) -> (i32, i32) {
    %c0_i32 = arith.constant 0 : i32
    %c0_i32_0 = arith.constant 0 : i32
    return %arg0, %c0_i32 : i32, i32
  }
}

</mosaic_0001>

<bundles_post_ra>
// kernel: ffn_forward.1
= control target key start
LH: loop header
LB: loop body
LE: loop exit
PB: predicated region body
PF: predicated region fallthrough
CT: control target
= control target key end

     0   :  { %s1670_s0 = inlined_call_operand.hbm [shape: f32[64,256], index: 0, kind: input, shape index: {}]   ;;  %s1671_s1 = inlined_call_operand.hbm [shape: bf16[256,128], index: 1, kind: input, shape index: {}]   ;;  %s1672_s2 = inlined_call_operand.vmem [shape: f32[1,128], index: 2, kind: input, shape index: {}]   ;;  %s1673_s3 = inlined_call_operand.hbm [shape: bf16[128,128], index: 3, kind: input, shape index: {}]   ;;  %s1674_s4 = inlined_call_operand.vmem [shape: f32[1,128], index: 4, kind: input, shape index: {}]   ;;  %s1675_s5 = inlined_call_operand.hbm [shape: bf16[128,128], index: 5, kind: input, shape index: {}]   ;;  %s1676_s6 = inlined_call_operand.vmem [shape: f32[1,128], index: 6, kind: input, shape index: {}]   ;;  %s1677_s7 = inlined_call_operand.hbm [shape: f32[64,128], index: 7, kind: output, shape index: {}]  }
   0x1   :  { %1682 = sst [smem:[#allocation15_spill]] %s1671_s1 }
   0x2   :  { %12 = vsyncpa [#allocation3], 0 }
   0x3   :  { %14 = vsyncpa [#allocation3 + $0x1], 0 }
   0x4   :  { %15 = vsyncpa [#allocation6], 0 }
   0x5   :  { %16 = vsyncpa [#allocation9], 0 }
   0x6   :  { %17 = vsyncpa [#allocation4], 0 }
   0x7   :  { %19 = vsyncpa [#allocation4 + $0x1], 0  ;;  %s1450_s24 = smov 0   ;;  %s1452_s25 = smov 0  }
   0x8   :  { %s1454_s26 = smov 0   ;;  %s1456_s27 = smov 0  }
   0x9 LB: > { %s1471_s28 = sadd.s32 4294967295, %s1397_s27   ;;  %s937_s29 = sadd.s32 4294967294, %s1397_s27   ;;  %s1397_s27 = sphi %s1456_s27, %s1703_s27   ;;  %s1393_s26 = sphi %s1454_s26, %s1702_s26   ;;  %s1389_s25 = sphi %s1452_s25, %s1701_s25   ;;  %s1385_s24 = sphi %s1450_s24, %s1700_s24  }
   0xa   : > { %p45_p0 = scmp.ne.s32.totalorder %s1389_s25, %s1385_s24  ;;  %p1678_p1 = scmp.eq.s32.totalorder %s1471_s28, 0 }
   0xb   : > { %p201_p3 = scmp.eq.s32.totalorder %s937_s29, 1  ;;  %p938_p5 = scmp.ge.s32.totalorder %s1397_s27, 1 }
   0xc   : > { %p1480_p4 = por %p1678_p1, %p45_p0  ;;  %p208_p7 = scmp.lt.s32.totalorder %s1397_s27, 3 }
   0xd   : > { %p1485_p6 = por %p201_p3, %p45_p0  ;;  %s1399_s10 = smov [#allocation5]  }
   0xe   : > { %s1683_s30 = scalar_select %p1480_p4, 1, 0 }
   0xf   : > { %s1684_s8 = scalar_select %p1485_p6, 1, 0 }
  0x10   : > { %p1490_p8 = pnand %p938_p5, %p208_p7  ;;  %s220_s11 = sshll.u32 %s1399_s10, 4  ;;  %s221_s11 = int_to_ptr.vmem [resolvable:$true] %s220_s11 }
  0x11   : > { %s1400_s13 = smov [#allocation7]   ;;  %s1401_s15 = smov [#allocation8]  }
  0x12   : > { %s1685_s9 = scalar_select %p1490_p8, 1, 0 }
  0x13   : > { %p1104_p9 = pneg %p1490_p8  ;;  %s236_s14 = sshll.u32 %s1400_s13, 4  ;;  %s237_s14 = int_to_ptr.vmem [resolvable:$true] %s236_s14 }
  0x14   : > { %s252_s16 = sshll.u32 %s1401_s15, 4  ;;  %s1230_s17 = scalar_lea.vmem %s221_s11, 2048  ;;  %s253_s16 = int_to_ptr.vmem [resolvable:$true] %s252_s16 }
  0x15   : > { %p1499_p11 = pnand %p1104_p9, %p1678_p1  ;;  %p1231_p13 = scmp.ne.s32.totalorder %s221_s11, %s1230_s17 }
  0x16   : > { %p1238_p5 = scmp.lt.s32.totalorder %s221_s11, %s221_s11  ;;  %p1239_p7 = scmp.lt.s32.totalorder %s1230_s17, %s1230_s17 }
  0x17   : > { %p1221_p12 = pneg %p1499_p11 }
  0x18   : > { %p1240_p9 = por %p1239_p7, %p1238_p5 }
  0x19   : > { %p1233_p0 = pnand %p1231_p13, %p1221_p12 }
  0x1b   : > { %p1234_p3 = pneg %p1233_p0 }
  0x1d   : > { %p1241_p10 = pnand %p1240_p9, %p1234_p3 }
  0x1f   : > { %1244 = shalt.err (!%p1241_p10)
}
  0x20   : > { %s1402_s18 = smov 64   ;;  %s1403_s19 = smov 4  }
  0x21   : > { %s1687_s1 = sld [smem:[#allocation15_spill]]  ;;  %s1256_s22 = scalar_lea.vmem %s237_s14, 1024 }
  0x22   : > { %p1257_p1 = scmp.ne.s32.totalorder %s237_s14, %s1256_s22  ;;  %p1264_p2 = scmp.lt.s32.totalorder %s237_s14, %s237_s14 }
  0x23   : > { %p1265_p6 = scmp.lt.s32.totalorder %s1256_s22, %s1256_s22 }
  0x24   : > { %p1259_p13 = pnand %p1257_p1, %p1221_p12 }
  0x25   : > { %p1266_p5 = por %p1265_p6, %p1264_p2 }
  0x26   : > { %p1260_p0 = pneg %p1259_p13 }
  0x27   : > { %1107 = dma.hbm_to_vmem [thread:$0]  (!%p1499_p11), %s1687_s1, 2048, %s221_s11, [#allocation6], %s1402_s18, %s1402_s18, %s1403_s19  }
  0x28   : > { %p1267_p3 = pnand %p1266_p5, %p1260_p0 }
  0x2a   : > { %1270 = shalt.err (!%p1267_p3)
}
  0x2b   : > { %1110 = dma.hbm_to_vmem [thread:$0]  (!%p1499_p11), %s1673_s3, 1024, %s237_s14, [#allocation6], %s1402_s18, %s1402_s18, %s1403_s19  }
  0x2c   : > { %s1282_s10 = scalar_lea.vmem %s253_s16, 1024  ;;  %p1290_p9 = scmp.lt.s32.totalorder %s253_s16, %s253_s16 }
  0x2d   : > { %p1283_p10 = scmp.ne.s32.totalorder %s253_s16, %s1282_s10  ;;  %p1291_p13 = scmp.lt.s32.totalorder %s1282_s10, %s1282_s10 }
  0x2f   : > { %p1285_p7 = pnand %p1283_p10, %p1221_p12  ;;  %p1292_p4 = por %p1291_p13, %p1290_p9 }
  0x31   : > { %p1286_p1 = pneg %p1285_p7 }
  0x33   : > { %p1293_p2 = pnand %p1292_p4, %p1286_p1 }
  0x35   : > { %1296 = shalt.err (!%p1293_p2)
}
  0x36   : > { %1113 = dma.hbm_to_vmem [thread:$0]  (!%p1499_p11), %s1675_s5, 1024, %s253_s16, [#allocation9], %s1402_s18, %s1402_s18, %s1403_s19  }
  0x37   : > { %s1530_s14 = sadd.s32 1, %s1397_s27   ;;  %s32_s12 = sadd.s32 1, %s1393_s26 }
  0x38   : > { %s29_s15 = ssub.s32 %s1397_s27, %s1530_s14  ;;  %p39_p6 = scmp.ne.s32.totalorder %s1393_s26, %s1389_s25 }
  0x39   : > { %p30_p4 = scmp.eq.s32.totalorder %s29_s15, 0  ;;  %p40_p12 = scmp.eq.s32.totalorder %s1397_s27, 0 }
  0x3a   : > { %p1125_p0 = scmp.lt.s32.totalorder %s1397_s27, 2  ;;  %p1688_p3 = scmp.eq.s32.totalorder %s1471_s28, 1 }
  0x3b   : > { %s1540_s17 = scalar_select %p30_p4, %s1393_s26, %s32_s12  }
  0x3c   : > { %p41_p5 = por %p40_p12, %p39_p6  ;;  %p1544_p10 = por %p1688_p3, %p39_p6 }
  0x3d   : > { %s269_s21 = sand.u32 1, %s1393_s26   ;;  %s998_s22 = sshll.u32 %s1397_s27, 10 }
  0x3e   : > { %s1689_s20 = scalar_select %p1544_p10, 1, 0 }
  0x3f   : > { %s943_s16 = sshll.u32 %s269_s21, 6  ;;  %s1553_s23 = scalar_lea.hbm %s1670_s0, %s998_s22 }
  0x40   : > { %s273_s29 = scalar_lea.vmem [#allocation2], %s943_s16  ;;  %p1555_p11 = pnand %p1125_p0, %p41_p5 }
  0x41   : > { %s281_s10 = sshll.u32 %s273_s29, 4  ;;  %s1561_s13 = scalar_lea.sflag [#allocation3], %s269_s21  ;;  %s1559_s10 = int_to_ptr.vmem [resolvable:$true] %s281_s10 }
  0x42   : > { %s1297_s15 = scalar_lea.hbm %s1553_s23, 1024  ;;  %p1299_p1 = pneg %p1555_p11 }
  0x43   : > { %p1298_p7 = scmp.ne.s32.totalorder %s1553_s23, %s1297_s15  ;;  %s1302_s16 = scalar_lea.hbm %s1670_s0, 2048 }
  0x44   : > { %p1303_p2 = scmp.lt.s32.totalorder %s1553_s23, %s1670_s0  ;;  %p1304_p4 = scmp.lt.s32.totalorder %s1302_s16, %s1297_s15 }
  0x45   : > { %p1300_p9 = pnand %p1299_p1, %p1298_p7 }
  0x46   : > { %p1305_p6 = por %p1304_p4, %p1303_p2 }
  0x47   : > { %p1301_p13 = pneg %p1300_p9 }
  0x49   : > { %p1306_p12 = pnand %p1305_p6, %p1301_p13 }
  0x4b   : > { %1309 = shalt.err (!%p1306_p12)
}
  0x4c   : > { %s1310_s21 = scalar_lea.vmem %s1559_s10, 1024  ;;  %s1404_s29 = smov [#allocation2]  }
  0x4d   : > { %p1311_p0 = scmp.ne.s32.totalorder %s1559_s10, %s1310_s21  ;;  %s1315_s1 = sshll.u32 %s1404_s29, 4  ;;  %s1316_s1 = int_to_ptr.vmem [resolvable:$false] %s1315_s1 }
  0x4e   : > { %s1317_s12 = scalar_lea.vmem %s1316_s1, 2048  ;;  %p1318_p7 = scmp.lt.s32.totalorder %s1559_s10, %s1316_s1 }
  0x4f   : > { %p1313_p5 = pnand %p1311_p0, %p1299_p1  ;;  %p1319_p9 = scmp.lt.s32.totalorder %s1317_s12, %s1310_s21 }
  0x51   : > { %p1314_p3 = pneg %p1313_p5  ;;  %p1320_p10 = por %p1319_p9, %p1318_p7 }
  0x53   : > { %p1321_p8 = pnand %p1320_p10, %p1314_p3 }
  0x55   : > { %1324 = shalt.err (!%p1321_p8)
}
  0x56   : > { %s1405_s15 = smov 256   ;;  %s1406_s22 = smov 16  }
  0x57   : > { %1117 = dma.hbm_to_vmem [thread:$0]  (!%p1555_p11), %s1553_s23, 1024, %s1559_s10, %s1561_s13, %s1405_s15, %s1405_s15, %s1406_s22  }
  0x58   : > { %p1691_p1 = scmp.ne.s32.totalorder %s1685_s9, 0 }
  0x59   : > { %s1585_s16 = sand.u32 (!%p1691_p1), 1, %s1389_s25   ;;  %p1692_p8 = scmp.ne.s32.totalorder (!%p1691_p1), %s1683_s30, 0 }
  0x5a   : > { %293 = sbr.rel (%p1691_p1) target bundleno = 803 (0x323), region = 48  ;;  %s948_s1 = sshll.u32 (!%p1691_p1), %s1585_s16, 6 }
  0x5b   : > { %s296_s18 = scalar_lea.sflag (!%p1691_p1), [#allocation3], %s1585_s16  ;;  %s1589_s19 = scalar_lea.vmem (!%p1691_p1), [#allocation2], %s948_s1 }
  0x5f   : > { %1368 = dma.done.wait (%p1692_p8), %s296_s18, 1024  }
  0x60   : > { %1370 = vsyncadd (%p1692_p8), %s296_s18, 4294966272  ;;  %p1693_p10 = scmp.eq.s32.totalorder %s1471_s28, 0 }
  0x62   : > { %1372 = dma.done.wait (%p1693_p10), [#allocation6], 3072   ;;  %p1694_p11 = pmov %p1693_p10 }
  0x63   : > { %p1695_p13 = pmov %p1693_p10 }
  0x64   : > { %1374 = vsyncadd (%p1694_p11), [#allocation6], 4294964224 }
  0x65   : > { %1376 = dma.done.wait (%p1695_p13), [#allocation9], 1024   ;;  %p1696_p2 = pmov %p1693_p10 }
  0x66   : > { %v1171_v0 = vld [vmem:[#allocation5 + $0x78] sm:$0xff]   ;;  %v1173_v2 = vld [vmem:[#allocation5 + $0x70] sm:$0xff]   ;;  %v1175_v4 = vld [vmem:[#allocation5 + $0x68] sm:$0xff]   ;;  %s952_s21 = sshll.u32 %s1585_s16, 5  ;;  %s999_s12 = sshll.u32 %s1471_s28, 9 }
  0x67   : > { %1378 = vsyncadd (%p1696_p2), [#allocation9], 4294966272  ;;  %v1172_v1 = vld [vmem:[#allocation5 + $0x38] sm:$0xff]   ;;  %1000 = vmatprep.subr.bf16.mxu0 %v1171_v0  ;;  %v1174_v3 = vld [vmem:[#allocation5 + $0x30] sm:$0xff]   ;;  %s341_s29 = scalar_lea.vmem [#allocation10], %s952_s21  ;;  %s1625_s18 = scalar_lea.hbm %s1677_s7, %s999_s12 }
  0x68   : > { %1001 = vmatpush3.bf16.msra.mxu0 %v1172_v1  ;;  %v1176_v5 = vld [vmem:[#allocation5 + $0x28] sm:$0xff]   ;;  %v1177_v6 = vld [vmem:[#allocation5 + $0x60] sm:$0xff]   ;;  %v1179_v8 = vld [vmem:[#allocation5 + $0x58] sm:$0xff]   ;;  %s835_s15 = sshll.u32 %s341_s29, 4  ;;  %p1697_p6 = scmp.ne.s32.totalorder %s1689_s20, 0  ;;  %s1627_s15 = int_to_ptr.vmem [resolvable:$true] %s835_s15 }
  0x69   : > { %1002 = vmatprep.subr.bf16.mxu0 %v1173_v2  ;;  %v1178_v7 = vld [vmem:[#allocation5 + $0x20] sm:$0xff]   ;;  %v1180_v9 = vld [vmem:[#allocation5 + $0x18] sm:$0xff]   ;;  %v1181_v10 = vld [vmem:[#allocation5 + $0x50] sm:$0xff]   ;;  %s1325_s30 = scalar_lea.vmem %s1627_s15, 512  ;;  %s1407_s28 = smov [#allocation10]  }
  0x6a   : > { %v346_v11 = vld [vmem:[%s1589_s19 + $0x8] sm:$0xff]  ;;  %v348_v12 = vld [vmem:[%s1589_s19 + $0x18] sm:$0xff]  ;;  %v1182_v14 = vld [vmem:[#allocation5 + $0x10] sm:$0xff]   ;;  %p1326_p4 = scmp.ne.s32.totalorder %s1627_s15, %s1325_s30  ;;  %s1329_s9 = sshll.u32 %s1407_s28, 4  ;;  %s1330_s9 = int_to_ptr.vmem [resolvable:$false] %s1329_s9 }
  0x6b   : > { %v354_v13 = vpack.c.bf16 %v348_v12, %v346_v11  ;;  %v1183_v15 = vld [vmem:[#allocation5 + $0x48] sm:$0xff]   ;;  %v1187_v16 = vld [vmem:[#allocation7 + $0x38] sm:$0xff]   ;;  %v1188_v17 = vld [vmem:[#allocation7 + $0x30] sm:$0xff]   ;;  %s1331_s23 = scalar_lea.vmem %s1330_s9, 1024  ;;  %p1332_p5 = scmp.lt.s32.totalorder %s1627_s15, %s1330_s9 }
  0x6c   : > { %1003 = vmatpush3.bf16.msra.mxu0 %v1174_v3  ;;  %v1184_v18 = vld [vmem:[#allocation5 + $0x8] sm:$0xff]   ;;  %1048 = vmatprep.subr.bf16.mxu1 %v1187_v16  ;;  %v1185_v20 = vld [vmem:[#allocation5 + $0x40] sm:$0xff]   ;;  %v347_v23 = vld [vmem:[%s1589_s19 + $0x10] sm:$0xff]  ;;  %p1327_p12 = pnand %p1326_p4, %p1697_p6  ;;  %p1333_p3 = scmp.lt.s32.totalorder %s1331_s23, %s1325_s30 }
  0x6d   : > { %1004 = vmatprep.subr.bf16.mxu0 %v1175_v4  ;;  %524 = vmatprep.mubr.bf16.mxu0 %v354_v13  ;;  %v1189_v19 = vld [vmem:[#allocation7 + $0x28] sm:$0xff]   ;;  %v1186_v21 = vld [vmem:[#allocation5] sm:$0xff]   ;;  %v352_v25 = vld [vmem:[%s1589_s19 + $0x38] sm:$0xff] }
  0x6e   : > { %1049 = vmatpush3.bf16.msra.mxu1 %v1187_v16  ;;  %v345_v22 = vld [vmem:[%s1589_s19] sm:$0xff]  ;;  %v350_v24 = vld [vmem:[%s1589_s19 + $0x28] sm:$0xff]  ;;  %v351_v29 = vld [vmem:[%s1589_s19 + $0x30] sm:$0xff]  ;;  %p1328_p0 = pneg %p1327_p12  ;;  %p1334_p7 = por %p1333_p3, %p1332_p5 }
  0x6f   : > { %1050 = vmatprep.subr.bf16.mxu1 %v1188_v17  ;;  %v353_v26 = vpack.c.bf16 %v347_v23, %v345_v22  ;;  %v356_v27 = vpack.c.bf16 %v352_v25, %v350_v24  ;;  %v349_v28 = vld [vmem:[%s1589_s19 + $0x20] sm:$0xff]  ;;  %v1191_v32 = vld [vmem:[#allocation7 + $0x18] sm:$0xff]   ;;  %v1192_v33 = vld [vmem:[#allocation7 + $0x10] sm:$0xff]   ;;  %s822_s19 = scalar_lea.sflag [#allocation4], %s1585_s16 }
  0x70   : > { %1005 = vmatpush3.bf16.msra.mxu0 %v1176_v5  ;;  %v355_v30 = vpack.c.bf16 %v351_v29, %v349_v28  ;;  %v1190_v31 = vld [vmem:[#allocation7 + $0x20] sm:$0xff]   ;;  %v1193_v34 = vld [vmem:[#allocation7 + $0x8] sm:$0xff]   ;;  %v1195_v36 = vld [vmem:[#allocation8 + $0x38] sm:$0xff]   ;;  %p1335_p9 = pnand %p1334_p7, %p1328_p0 }
  0x71   : > { %1006 = vmatprep.subr.bf16.mxu0 %v1177_v6  ;;  %v1194_v35 = vld [vmem:[#allocation7] sm:$0xff]   ;;  %v1196_v37 = vld [vmem:[#allocation8 + $0x30] sm:$0xff]   ;;  %v1197_v38 = vld [vmem:[#allocation8 + $0x28] sm:$0xff]  }
  0x72   : > { %1051 = vmatpush3.bf16.msra.mxu1 %v1188_v17  ;;  %v1198_v39 = vld [vmem:[#allocation8 + $0x20] sm:$0xff]   ;;  %v1199_v40 = vld [vmem:[#allocation8 + $0x18] sm:$0xff]   ;;  %v1200_v0 = vld [vmem:[#allocation8 + $0x10] sm:$0xff]  }
  0x73   : > { %1052 = vmatprep.subr.bf16.mxu1 %v1189_v19  ;;  %v953_v45 = vld [vmem:[%s1672_s2] ss:$0 sm:$0xff]  ;;  %v1201_v1 = vld [vmem:[#allocation8 + $0x8] sm:$0xff]  }
  0x74   : > { %1007 = vmatpush3.bf16.msra.mxu0 %v1178_v7  ;;  %v1202_v2 = vld [vmem:[#allocation8] sm:$0xff]  }
  0x75   : > { %1008 = vmatprep.subr.bf16.mxu0 %v1179_v8  ;;  %v970_v5 = vld [vmem:[%s1674_s4] ss:$0 sm:$0xff] }
  0x76   : > { %1053 = vmatpush3.bf16.msra.mxu1 %v1189_v19 }
  0x77   : > { %1054 = vmatprep.subr.bf16.mxu1 %v1190_v31 }
  0x78   : > { %1009 = vmatpush3.bf16.msra.mxu0 %v1180_v9 }
  0x79   : > { %1010 = vmatprep.subr.bf16.mxu0 %v1181_v10 }
  0x7a   : > { %1055 = vmatpush3.bf16.msra.mxu1 %v1190_v31 }
  0x7b   : > { %1056 = vmatprep.subr.bf16.mxu1 %v1191_v32 }
  0x7c   : > { %1011 = vmatpush3.bf16.msra.mxu0 %v1182_v14 }
  0x7d   : > { %1012 = vmatprep.subr.bf16.mxu0 %v1183_v15 }
  0x7e   : > { %1057 = vmatpush3.bf16.msra.mxu1 %v1191_v32 }
  0x7f   : > { %1058 = vmatprep.subr.bf16.mxu1 %v1192_v33 }
  0x80   : > { %1013 = vmatpush3.bf16.msra.mxu0 %v1184_v18  ;;  %v979_v18 = vld [vmem:[%s1676_s6] ss:$0 sm:$0xff] }
  0x81   : > { %1014 = vmatprep.subr.bf16.mxu0 %v1185_v20 }
  0x82   : > { %1059 = vmatpush3.bf16.msra.mxu1 %v1192_v33 }
  0x83   : > { %1060 = vmatprep.subr.bf16.mxu1 %v1193_v34 }
  0x84   : > { %1015 = vmatpush3.bf16.msra.mxu0 %v1186_v21 }
  0x85   : > { %1068 = vmatprep.subr.bf16.mxu0 %v1195_v36 }
  0x86   : > { %1061 = vmatpush3.bf16.msra.mxu1 %v1193_v34 }
  0x87   : > { %525 = vmatmul.mubr.bf16.vlgmr.msra.gmra.mxu0 %v353_v26  ;;  %1062 = vmatprep.subr.bf16.mxu1 %v1194_v35 }
  0x88   : > { %532 = vmatprep.mubr.bf16.mxu0 %v356_v27  ;;  %1069 = vmatpush3.bf16.msra.mxu0 %v1195_v36 }
  0x89   : > { %1070 = vmatprep.subr.bf16.mxu0 %v1196_v37 }
  0x8a   : > { %1063 = vmatpush3.bf16.msra.mxu1 %v1194_v35 }
  0x8c   : > { %1071 = vmatpush3.bf16.msra.mxu0 %v1196_v37 }
  0x8d   : > { %1072 = vmatprep.subr.bf16.mxu0 %v1197_v38 }
  0x8f   : > { %533 = vmatmul.mubr.bf16.gmra.mxu0 %v355_v30 }
  0x90   : > { %1073 = vmatpush3.bf16.msra.mxu0 %v1197_v38 }
  0x91   : > { %1074 = vmatprep.subr.bf16.mxu0 %v1198_v39 }
  0x94   : > { %1075 = vmatpush3.bf16.msra.mxu0 %v1198_v39 }
  0x95   : > { %1076 = vmatprep.subr.bf16.mxu0 %v1199_v40 }
  0x98   : > { %1077 = vmatpush3.bf16.msra.mxu0 %v1199_v40 }
  0x99   : > { %1078 = vmatprep.subr.bf16.mxu0 %v1200_v0 }
  0x9c   : > { %1079 = vmatpush3.bf16.msra.mxu0 %v1200_v0 }
  0x9d   : > { %1080 = vmatprep.subr.bf16.mxu0 %v1201_v1 }
  0xa0   : > { %1081 = vmatpush3.bf16.msra.mxu0 %v1201_v1 }
  0xa1   : > { %1082 = vmatprep.subr.bf16.mxu0 %v1202_v2 }
  0xa4   : > { %1083 = vmatpush3.bf16.msra.mxu0 %v1202_v2 }
 0x147   : > { %v1016_v41 = vpop.f32.mrf.mxu0 }
 0x149   : > { %v1017_v42 = vpop.f32.mrf.mxu0 }
 0x14a   : > { %v1018_v43 = vadd.f32 %v1017_v42, %v1016_v41 }
 0x14b   : > { %v1019_v44 = vpop.f32.mrf.mxu0 }
 0x14c   : > { %v527_v48 = vadd.f32 %v1018_v43, %v953_v45 }
 0x14d   : > { %v1020_v46 = vpop.f32.mrf.mxu0 }
 0x14e   : > { %v1021_v47 = vadd.f32 %v1020_v46, %v1019_v44  ;;  %v541_v53 = vmax.f32 %v527_v48, 0.0 }
 0x14f   : > { %v1022_v49 = vpop.f32.mrf.mxu0 }
 0x150   : > { %v530_v50 = vadd.f32 %v1021_v47, %v953_v45 }
 0x151   : > { %v1023_v51 = vpop.f32.mrf.mxu0 }
 0x152   : > { %v1024_v52 = vadd.f32 %v1023_v51, %v1022_v49  ;;  %v542_v54 = vmax.f32 %v530_v50, 0.0 }
 0x153   : > { %v1025_v55 = vpop.f32.mrf.mxu0 }
 0x154   : > { %v545_v56 = vpack.c.bf16 %v542_v54, %v541_v53  ;;  %v535_v58 = vadd.f32 %v1024_v52, %v953_v45 }
 0x155   : > { %v1026_v57 = vpop.f32.mrf.mxu0 }
 0x156   : > { %v1027_v59 = vadd.f32 %v1026_v57, %v1025_v55  ;;  %1064 = vmatprep.mubr.bf16.mxu1 %v545_v56  ;;  %v543_v61 = vmax.f32 %v535_v58, 0.0 }
 0x158   : > { %v538_v60 = vadd.f32 %v1027_v59, %v953_v45 }
 0x15a   : > { %v544_v62 = vmax.f32 %v538_v60, 0.0 }
 0x15c   : > { %v546_v63 = vpack.c.bf16 %v544_v62, %v543_v61 }
 0x15e   : > { %1065 = vmatmul.mubr.bf16.vlgmr.msra.gmra.mxu1 %v546_v63 }
 0x21e   : > { %v1066_v3 = vpop.f32.mrf.mxu1 }
 0x21f   : > { %v661_v9 = vadd.f32 %v1066_v3, %v970_v5 }
 0x220   : > { %v652_v4 = vpop.f32.mrf.mxu1 }
 0x221   : > { %v653_v7 = vadd.f32 %v970_v5, %v652_v4  ;;  %v669_v15 = vmax.f32 %v661_v9, 0.0 }
 0x222   : > { %v1067_v6 = vpop.f32.mrf.mxu1 }
 0x223   : > { %v664_v8 = vadd.f32 %v1067_v6, %v970_v5  ;;  %v667_v13 = vmax.f32 %v653_v7, 0.0 }
 0x224   : > { %v655_v10 = vpop.f32.mrf.mxu1 }
 0x225   : > { %v656_v11 = vadd.f32 %v970_v5, %v655_v10  ;;  %v670_v12 = vmax.f32 %v664_v8, 0.0 }
 0x227   : > { %v668_v14 = vmax.f32 %v656_v11, 0.0  ;;  %v672_v17 = vpack.c.bf16 %v670_v12, %v669_v15 }
 0x229   : > { %v671_v16 = vpack.c.bf16 %v668_v14, %v667_v13 }
 0x22b   : > { %1084 = vmatprep.mubr.bf16.mxu0 %v671_v16 }
 0x22c   : > { %1085 = vmatmul.mubr.bf16.vlgmr.msra.gmra.mxu0 %v672_v17 }
 0x2ec   : > { %v1086_v19 = vpop.f32.mrf.mxu0 }
 0x2ed   : > { %v787_v20 = vadd.f32 %v1086_v19, %v979_v18 }
 0x2ee   : > { %v778_v21 = vpop.f32.mrf.mxu0 }
 0x2ef   : > { %v990_v22 = vmul.f32 -1.442695, %v787_v20  ;;  %v779_v23 = vadd.f32 %v979_v18, %v778_v21 }
 0x2f0   : > { %v1087_v24 = vpop.f32.mrf.mxu0 }
 0x2f1   : > { %1203 = vpow2.f32 %v990_v22  ;;  %v988_v25 = vmul.f32 -1.442695, %v779_v23  ;;  %v790_v26 = vadd.f32 %v1087_v24, %v979_v18 }
 0x2f2   : > { %v781_v27 = vpop.f32.mrf.mxu0 }
 0x2f3   : > { %1205 = vpow2.f32 %v988_v25  ;;  %v991_v28 = vmul.f32 -1.442695, %v790_v26  ;;  %v782_v29 = vadd.f32 %v979_v18, %v781_v27 }
 0x2f5   : > { %1207 = vpow2.f32 %v991_v28  ;;  %v989_v30 = vmul.f32 -1.442695, %v782_v29 }
 0x2f7   : > { %1209 = vpow2.f32 %v989_v30 }
 0x2fe   : > { %v1204_v31 = vpop.eup %1203 }
 0x2ff   : > { %v807_v32 = vadd.f32 1.0, %v1204_v31 }
 0x300   : > { %v1206_v33 = vpop.eup %1205 }
 0x301   : > { %1211 = vrcp.f32 %v807_v32  ;;  %v805_v34 = vadd.f32 1.0, %v1206_v33 }
 0x302   : > { %v1208_v35 = vpop.eup %1207 }
 0x303   : > { %1213 = vrcp.f32 %v805_v34  ;;  %v808_v36 = vadd.f32 1.0, %v1208_v35 }
 0x304   : > { %v1210_v37 = vpop.eup %1209 }
 0x305   : > { %1215 = vrcp.f32 %v808_v36  ;;  %v806_v38 = vadd.f32 1.0, %v1210_v37 }
 0x307   : > { %1217 = vrcp.f32 %v806_v38 }
 0x30e   : > { %v1212_v39 = vpop.eup %1211 }
 0x30f   : > { %819 = vst [vmem:[%s341_s29 + $0x10] sm:$0xff] %v1212_v39 }
 0x310   : > { %v1214_v40 = vpop.eup %1213 }
 0x311   : > { %817 = vst [vmem:[%s341_s29] sm:$0xff] %v1214_v40 }
 0x312   : > { %v1216_v41 = vpop.eup %1215 }
 0x313   : > { %820 = vst [vmem:[%s341_s29 + $0x18] sm:$0xff] %v1216_v41 }
 0x314   : > { %v1218_v42 = vpop.eup %1217 }
 0x315   : > { %818 = vst [vmem:[%s341_s29 + $0x8] sm:$0xff] %v1218_v42 }
 0x316   : > { %1338 = shalt.err (!%p1335_p9)
}
 0x317   : > { %s1339_s10 = scalar_lea.hbm %s1625_s18, 512  ;;  %s1343_s21 = scalar_lea.hbm %s1677_s7, 1024 }
 0x318   : > { %p1340_p1 = scmp.ne.s32.totalorder %s1625_s18, %s1339_s10  ;;  %p1344_p11 = scmp.lt.s32.totalorder %s1625_s18, %s1677_s7 }
 0x319   : > { %p1345_p13 = scmp.lt.s32.totalorder %s1343_s21, %s1339_s10 }
 0x31a   : > { %p1341_p8 = pnand %p1340_p1, %p1697_p6 }
 0x31b   : > { %p1346_p2 = por %p1345_p13, %p1344_p11 }
 0x31c   : > { %p1342_p10 = pneg %p1341_p8 }
 0x31e   : > { %p1347_p4 = pnand %p1346_p2, %p1342_p10 }
 0x320   : > { %1350 = shalt.err (!%p1347_p4)
}
 0x321   : > { %s1408_s22 = smov 128   ;;  %s1409_s1 = smov 8  }
 0x322   : > { %1102 = dma.vmem_to_hbm [thread:$0]  (%p1697_p6), %s1627_s15, 512, %s1625_s18, %s822_s19, %s1408_s22, %s1408_s22, %s1409_s1  }
 0x323 PF: > { %s850_s30 = sand.u32 1, %s1385_s24   ;;  %p1698_p12 = scmp.ne.s32.totalorder %s1684_s8, 0 }
 0x324   : > { %p1699_p0 = scmp.ge.s32.totalorder %s1397_s27, 2  ;;  %s851_s28 = scalar_lea.sflag [#allocation4], %s850_s30 }
 0x326   : > { %p1119_p5 = pnand %p1699_p0, %p1698_p12 }
 0x328   : > { %p1120_p3 = pneg %p1119_p5 }
 0x32a   : > { %1380 = dma.done.wait (%p1120_p3), %s851_s28, 512  }
 0x32b   : > { %1382 = vsyncadd (%p1120_p3), %s851_s28, 4294966784  ;;  %p22_p7 = scmp.ge.s32.totalorder %s1530_s14, 4   ;;  %s1700_s24 = smov %s1389_s25 }
 0x32c   : > { %s1701_s25 = smov %s1393_s26  ;;  %s1702_s26 = smov %s1540_s17 }
 0x32d   : > { %s1703_s27 = smov %s1530_s14  ;;  %24 = sbr.rel (!%p22_p7) target bundleno = 9 (0x9), region = 105 }
 0x332   :  { %856 = vsyncpa [#allocation3], 1 }
 0x333   :  { %858 = vsyncpa [#allocation3 + $0x1], 1 }
 0x334   :  { %859 = vsyncpa [#allocation6], 1 }
 0x335   :  { %860 = vsyncpa [#allocation9], 1 }
 0x336   :  { %861 = vsyncpa [#allocation4], 1 }
 0x337   :  { %863 = vsyncpa [#allocation4 + $0x1], 1 }

// kernel: ffn_forward.1
= control target key start
LH: loop header
LB: loop body
LE: loop exit
PB: predicated region body
PF: predicated region fallthrough
CT: control target
= control target key end

     0   :  { %s1670_s0 = inlined_call_operand.hbm [shape: f32[64,256], index: 0, kind: input, shape index: {}]   ;;  %s1671_s1 = inlined_call_operand.hbm [shape: bf16[256,128], index: 1, kind: input, shape index: {}]   ;;  %s1672_s2 = inlined_call_operand.vmem [shape: f32[1,128], index: 2, kind: input, shape index: {}]   ;;  %s1673_s3 = inlined_call_operand.hbm [shape: bf16[128,128], index: 3, kind: input, shape index: {}]   ;;  %s1674_s4 = inlined_call_operand.vmem [shape: f32[1,128], index: 4, kind: input, shape index: {}]   ;;  %s1675_s5 = inlined_call_operand.hbm [shape: bf16[128,128], index: 5, kind: input, shape index: {}]   ;;  %s1676_s6 = inlined_call_operand.vmem [shape: f32[1,128], index: 6, kind: input, shape index: {}]   ;;  %s1677_s7 = inlined_call_operand.hbm [shape: f32[64,128], index: 7, kind: output, shape index: {}]  }
   0x1   :  { %1682 = sst [smem:[#allocation15_spill]] %s1671_s1 }
   0x2   :  { %12 = vsyncpa [#allocation3], 0 }
   0x3   :  { %14 = vsyncpa [#allocation3 + $0x1], 0 }
   0x4   :  { %15 = vsyncpa [#allocation6], 0 }
   0x5   :  { %16 = vsyncpa [#allocation9], 0 }
   0x6   :  { %17 = vsyncpa [#allocation4], 0 }
   0x7   :  { %19 = vsyncpa [#allocation4 + $0x1], 0  ;;  %s1450_s24 = smov 0   ;;  %s1452_s25 = smov 0  }
   0x8   :  { %s1454_s26 = smov 0   ;;  %s1456_s27 = smov 0  }
   0x9 LB: > { %s1471_s28 = sadd.s32 4294967295, %s1397_s27   ;;  %s937_s29 = sadd.s32 4294967294, %s1397_s27   ;;  %s1397_s27 = sphi %s1456_s27, %s1703_s27   ;;  %s1393_s26 = sphi %s1454_s26, %s1702_s26   ;;  %s1389_s25 = sphi %s1452_s25, %s1701_s25   ;;  %s1385_s24 = sphi %s1450_s24, %s1700_s24  }
   0xa   : > { %p45_p0 = scmp.ne.s32.totalorder %s1389_s25, %s1385_s24  ;;  %p1678_p1 = scmp.eq.s32.totalorder %s1471_s28, 0 }
   0xb   : > { %p201_p3 = scmp.eq.s32.totalorder %s937_s29, 1  ;;  %p938_p5 = scmp.ge.s32.totalorder %s1397_s27, 1 }
   0xc   : > { %p1480_p4 = por %p1678_p1, %p45_p0  ;;  %p208_p7 = scmp.lt.s32.totalorder %s1397_s27, 3 }
   0xd   : > { %p1485_p6 = por %p201_p3, %p45_p0  ;;  %s1399_s10 = smov [#allocation5]  }
   0xe   : > { %s1683_s30 = scalar_select %p1480_p4, 1, 0 }
   0xf   : > { %s1684_s8 = scalar_select %p1485_p6, 1, 0 }
  0x10   : > { %p1490_p8 = pnand %p938_p5, %p208_p7  ;;  %s220_s11 = sshll.u32 %s1399_s10, 4  ;;  %s221_s11 = int_to_ptr.vmem [resolvable:$true] %s220_s11 }
  0x11   : > { %s1400_s13 = smov [#allocation7]   ;;  %s1401_s15 = smov [#allocation8]  }
  0x12   : > { %s1685_s9 = scalar_select %p1490_p8, 1, 0 }
  0x13   : > { %p1104_p9 = pneg %p1490_p8  ;;  %s236_s14 = sshll.u32 %s1400_s13, 4  ;;  %s237_s14 = int_to_ptr.vmem [resolvable:$true] %s236_s14 }
  0x14   : > { %s252_s16 = sshll.u32 %s1401_s15, 4  ;;  %s1230_s17 = scalar_lea.vmem %s221_s11, 2048  ;;  %s253_s16 = int_to_ptr.vmem [resolvable:$true] %s252_s16 }
  0x15   : > { %p1499_p11 = pnand %p1104_p9, %p1678_p1  ;;  %p1231_p13 = scmp.ne.s32.totalorder %s221_s11, %s1230_s17 }
  0x16   : > { %p1238_p5 = scmp.lt.s32.totalorder %s221_s11, %s221_s11  ;;  %p1239_p7 = scmp.lt.s32.totalorder %s1230_s17, %s1230_s17 }
  0x17   : > { %p1221_p12 = pneg %p1499_p11 }
  0x18   : > { %p1240_p9 = por %p1239_p7, %p1238_p5 }
  0x19   : > { %p1233_p0 = pnand %p1231_p13, %p1221_p12 }
  0x1b   : > { %p1234_p3 = pneg %p1233_p0 }
  0x1d   : > { %p1241_p10 = pnand %p1240_p9, %p1234_p3 }
  0x1f   : > { %1244 = shalt.err (!%p1241_p10)
}
  0x20   : > { %s1402_s18 = smov 64   ;;  %s1403_s19 = smov 4  }
  0x21   : > { %s1687_s1 = sld [smem:[#allocation15_spill]]  ;;  %s1256_s22 = scalar_lea.vmem %s237_s14, 1024 }
  0x22   : > { %p1257_p1 = scmp.ne.s32.totalorder %s237_s14, %s1256_s22  ;;  %p1264_p2 = scmp.lt.s32.totalorder %s237_s14, %s237_s14 }
  0x23   : > { %p1265_p6 = scmp.lt.s32.totalorder %s1256_s22, %s1256_s22 }
  0x24   : > { %p1259_p13 = pnand %p1257_p1, %p1221_p12 }
  0x25   : > { %p1266_p5 = por %p1265_p6, %p1264_p2 }
  0x26   : > { %p1260_p0 = pneg %p1259_p13 }
  0x27   : > { %1107 = dma.hbm_to_vmem [thread:$0]  (!%p1499_p11), %s1687_s1, 2048, %s221_s11, [#allocation6], %s1402_s18, %s1402_s18, %s1403_s19  }
  0x28   : > { %p1267_p3 = pnand %p1266_p5, %p1260_p0 }
  0x2a   : > { %1270 = shalt.err (!%p1267_p3)
}
  0x2b   : > { %1110 = dma.hbm_to_vmem [thread:$0]  (!%p1499_p11), %s1673_s3, 1024, %s237_s14, [#allocation6], %s1402_s18, %s1402_s18, %s1403_s19  }
  0x2c   : > { %s1282_s10 = scalar_lea.vmem %s253_s16, 1024  ;;  %p1290_p9 = scmp.lt.s32.totalorder %s253_s16, %s253_s16 }
  0x2d   : > { %p1283_p10 = scmp.ne.s32.totalorder %s253_s16, %s1282_s10  ;;  %p1291_p13 = scmp.lt.s32.totalorder %s1282_s10, %s1282_s10 }
  0x2f   : > { %p1285_p7 = pnand %p1283_p10, %p1221_p12  ;;  %p1292_p4 = por %p1291_p13, %p1290_p9 }
  0x31   : > { %p1286_p1 = pneg %p1285_p7 }
  0x33   : > { %p1293_p2 = pnand %p1292_p4, %p1286_p1 }
  0x35   : > { %1296 = shalt.err (!%p1293_p2)
}
  0x36   : > { %1113 = dma.hbm_to_vmem [thread:$0]  (!%p1499_p11), %s1675_s5, 1024, %s253_s16, [#allocation9], %s1402_s18, %s1402_s18, %s1403_s19  }
  0x37   : > { %s1530_s14 = sadd.s32 1, %s1397_s27   ;;  %s32_s12 = sadd.s32 1, %s1393_s26 }
  0x38   : > { %s29_s15 = ssub.s32 %s1397_s27, %s1530_s14  ;;  %p39_p6 = scmp.ne.s32.totalorder %s1393_s26, %s1389_s25 }
  0x39   : > { %p30_p4 = scmp.eq.s32.totalorder %s29_s15, 0  ;;  %p40_p12 = scmp.eq.s32.totalorder %s1397_s27, 0 }
  0x3a   : > { %p1125_p0 = scmp.lt.s32.totalorder %s1397_s27, 2  ;;  %p1688_p3 = scmp.eq.s32.totalorder %s1471_s28, 1 }
  0x3b   : > { %s1540_s17 = scalar_select %p30_p4, %s1393_s26, %s32_s12  }
  0x3c   : > { %p41_p5 = por %p40_p12, %p39_p6  ;;  %p1544_p10 = por %p1688_p3, %p39_p6 }
  0x3d   : > { %s269_s21 = sand.u32 1, %s1393_s26   ;;  %s998_s22 = sshll.u32 %s1397_s27, 10 }
  0x3e   : > { %s1689_s20 = scalar_select %p1544_p10, 1, 0 }
  0x3f   : > { %s943_s16 = sshll.u32 %s269_s21, 6  ;;  %s1553_s23 = scalar_lea.hbm %s1670_s0, %s998_s22 }
  0x40   : > { %s273_s29 = scalar_lea.vmem [#allocation2], %s943_s16  ;;  %p1555_p11 = pnand %p1125_p0, %p41_p5 }
  0x41   : > { %s281_s10 = sshll.u32 %s273_s29, 4  ;;  %s1561_s13 = scalar_lea.sflag [#allocation3], %s269_s21  ;;  %s1559_s10 = int_to_ptr.vmem [resolvable:$true] %s281_s10 }
  0x42   : > { %s1297_s15 = scalar_lea.hbm %s1553_s23, 1024  ;;  %p1299_p1 = pneg %p1555_p11 }
  0x43   : > { %p1298_p7 = scmp.ne.s32.totalorder %s1553_s23, %s1297_s15  ;;  %s1302_s16 = scalar_lea.hbm %s1670_s0, 2048 }
  0x44   : > { %p1303_p2 = scmp.lt.s32.totalorder %s1553_s23, %s1670_s0  ;;  %p1304_p4 = scmp.lt.s32.totalorder %s1302_s16, %s1297_s15 }
  0x45   : > { %p1300_p9 = pnand %p1299_p1, %p1298_p7 }
  0x46   : > { %p1305_p6 = por %p1304_p4, %p1303_p2 }
  0x47   : > { %p1301_p13 = pneg %p1300_p9 }
  0x49   : > { %p1306_p12 = pnand %p1305_p6, %p1301_p13 }
  0x4b   : > { %1309 = shalt.err (!%p1306_p12)
}
  0x4c   : > { %s1310_s21 = scalar_lea.vmem %s1559_s10, 1024  ;;  %s1404_s29 = smov [#allocation2]  }
  0x4d   : > { %p1311_p0 = scmp.ne.s32.totalorder %s1559_s10, %s1310_s21  ;;  %s1315_s1 = sshll.u32 %s1404_s29, 4  ;;  %s1316_s1 = int_to_ptr.vmem [resolvable:$false] %s1315_s1 }
  0x4e   : > { %s1317_s12 = scalar_lea.vmem %s1316_s1, 2048  ;;  %p1318_p7 = scmp.lt.s32.totalorder %s1559_s10, %s1316_s1 }
  0x4f   : > { %p1313_p5 = pnand %p1311_p0, %p1299_p1  ;;  %p1319_p9 = scmp.lt.s32.totalorder %s1317_s12, %s1310_s21 }
  0x51   : > { %p1314_p3 = pneg %p1313_p5  ;;  %p1320_p10 = por %p1319_p9, %p1318_p7 }
  0x53   : > { %p1321_p8 = pnand %p1320_p10, %p1314_p3 }
  0x55   : > { %1324 = shalt.err (!%p1321_p8)
}
  0x56   : > { %s1405_s15 = smov 256   ;;  %s1406_s22 = smov 16  }
  0x57   : > { %1117 = dma.hbm_to_vmem [thread:$0]  (!%p1555_p11), %s1553_s23, 1024, %s1559_s10, %s1561_s13, %s1405_s15, %s1405_s15, %s1406_s22  }
  0x58   : > { %p1691_p1 = scmp.ne.s32.totalorder %s1685_s9, 0 }
  0x59   : > { %s1585_s16 = sand.u32 (!%p1691_p1), 1, %s1389_s25   ;;  %p1692_p8 = scmp.ne.s32.totalorder (!%p1691_p1), %s1683_s30, 0 }
  0x5a   : > { %293 = sbr.rel (%p1691_p1) target bundleno = 803 (0x323), region = 48  ;;  %s948_s1 = sshll.u32 (!%p1691_p1), %s1585_s16, 6 }
  0x5b   : > { %s296_s18 = scalar_lea.sflag (!%p1691_p1), [#allocation3], %s1585_s16  ;;  %s1589_s19 = scalar_lea.vmem (!%p1691_p1), [#allocation2], %s948_s1 }
  0x5f   : > { %1368 = dma.done.wait (%p1692_p8), %s296_s18, 1024  }
  0x60   : > { %1370 = vsyncadd (%p1692_p8), %s296_s18, 4294966272  ;;  %p1693_p10 = scmp.eq.s32.totalorder %s1471_s28, 0 }
  0x62   : > { %1372 = dma.done.wait (%p1693_p10), [#allocation6], 3072   ;;  %p1694_p11 = pmov %p1693_p10 }
  0x63   : > { %p1695_p13 = pmov %p1693_p10 }
  0x64   : > { %1374 = vsyncadd (%p1694_p11), [#allocation6], 4294964224 }
  0x65   : > { %1376 = dma.done.wait (%p1695_p13), [#allocation9], 1024   ;;  %p1696_p2 = pmov %p1693_p10 }
  0x66   : > { %v1171_v0 = vld [vmem:[#allocation5 + $0x78] sm:$0xff]   ;;  %v1173_v2 = vld [vmem:[#allocation5 + $0x70] sm:$0xff]   ;;  %v1175_v4 = vld [vmem:[#allocation5 + $0x68] sm:$0xff]   ;;  %s952_s21 = sshll.u32 %s1585_s16, 5  ;;  %s999_s12 = sshll.u32 %s1471_s28, 9 }
  0x67   : > { %1378 = vsyncadd (%p1696_p2), [#allocation9], 4294966272  ;;  %v1172_v1 = vld [vmem:[#allocation5 + $0x38] sm:$0xff]   ;;  %1000 = vmatprep.subr.bf16.mxu0 %v1171_v0  ;;  %v1174_v3 = vld [vmem:[#allocation5 + $0x30] sm:$0xff]   ;;  %s341_s29 = scalar_lea.vmem [#allocation10], %s952_s21  ;;  %s1625_s18 = scalar_lea.hbm %s1677_s7, %s999_s12 }
  0x68   : > { %1001 = vmatpush3.bf16.msra.mxu0 %v1172_v1  ;;  %v1176_v5 = vld [vmem:[#allocation5 + $0x28] sm:$0xff]   ;;  %v1177_v6 = vld [vmem:[#allocation5 + $0x60] sm:$0xff]   ;;  %v1179_v8 = vld [vmem:[#allocation5 + $0x58] sm:$0xff]   ;;  %s835_s15 = sshll.u32 %s341_s29, 4  ;;  %p1697_p6 = scmp.ne.s32.totalorder %s1689_s20, 0  ;;  %s1627_s15 = int_to_ptr.vmem [resolvable:$true] %s835_s15 }
  0x69   : > { %1002 = vmatprep.subr.bf16.mxu0 %v1173_v2  ;;  %v1178_v7 = vld [vmem:[#allocation5 + $0x20] sm:$0xff]   ;;  %v1180_v9 = vld [vmem:[#allocation5 + $0x18] sm:$0xff]   ;;  %v1181_v10 = vld [vmem:[#allocation5 + $0x50] sm:$0xff]   ;;  %s1325_s30 = scalar_lea.vmem %s1627_s15, 512  ;;  %s1407_s28 = smov [#allocation10]  }
  0x6a   : > { %v346_v11 = vld [vmem:[%s1589_s19 + $0x8] sm:$0xff]  ;;  %v348_v12 = vld [vmem:[%s1589_s19 + $0x18] sm:$0xff]  ;;  %v1182_v14 = vld [vmem:[#allocation5 + $0x10] sm:$0xff]   ;;  %p1326_p4 = scmp.ne.s32.totalorder %s1627_s15, %s1325_s30  ;;  %s1329_s9 = sshll.u32 %s1407_s28, 4  ;;  %s1330_s9 = int_to_ptr.vmem [resolvable:$false] %s1329_s9 }
  0x6b   : > { %v354_v13 = vpack.c.bf16 %v348_v12, %v346_v11  ;;  %v1183_v15 = vld [vmem:[#allocation5 + $0x48] sm:$0xff]   ;;  %v1187_v16 = vld [vmem:[#allocation7 + $0x38] sm:$0xff]   ;;  %v1188_v17 = vld [vmem:[#allocation7 + $0x30] sm:$0xff]   ;;  %s1331_s23 = scalar_lea.vmem %s1330_s9, 1024  ;;  %p1332_p5 = scmp.lt.s32.totalorder %s1627_s15, %s1330_s9 }
  0x6c   : > { %1003 = vmatpush3.bf16.msra.mxu0 %v1174_v3  ;;  %v1184_v18 = vld [vmem:[#allocation5 + $0x8] sm:$0xff]   ;;  %1048 = vmatprep.subr.bf16.mxu1 %v1187_v16  ;;  %v1185_v20 = vld [vmem:[#allocation5 + $0x40] sm:$0xff]   ;;  %v347_v23 = vld [vmem:[%s1589_s19 + $0x10] sm:$0xff]  ;;  %p1327_p12 = pnand %p1326_p4, %p1697_p6  ;;  %p1333_p3 = scmp.lt.s32.totalorder %s1331_s23, %s1325_s30 }
  0x6d   : > { %1004 = vmatprep.subr.bf16.mxu0 %v1175_v4  ;;  %524 = vmatprep.mubr.bf16.mxu0 %v354_v13  ;;  %v1189_v19 = vld [vmem:[#allocation7 + $0x28] sm:$0xff]   ;;  %v1186_v21 = vld [vmem:[#allocation5] sm:$0xff]   ;;  %v352_v25 = vld [vmem:[%s1589_s19 + $0x38] sm:$0xff] }
  0x6e   : > { %1049 = vmatpush3.bf16.msra.mxu1 %v1187_v16  ;;  %v345_v22 = vld [vmem:[%s1589_s19] sm:$0xff]  ;;  %v350_v24 = vld [vmem:[%s1589_s19 + $0x28] sm:$0xff]  ;;  %v351_v29 = vld [vmem:[%s1589_s19 + $0x30] sm:$0xff]  ;;  %p1328_p0 = pneg %p1327_p12  ;;  %p1334_p7 = por %p1333_p3, %p1332_p5 }
  0x6f   : > { %1050 = vmatprep.subr.bf16.mxu1 %v1188_v17  ;;  %v353_v26 = vpack.c.bf16 %v347_v23, %v345_v22  ;;  %v356_v27 = vpack.c.bf16 %v352_v25, %v350_v24  ;;  %v349_v28 = vld [vmem:[%s1589_s19 + $0x20] sm:$0xff]  ;;  %v1191_v32 = vld [vmem:[#allocation7 + $0x18] sm:$0xff]   ;;  %v1192_v33 = vld [vmem:[#allocation7 + $0x10] sm:$0xff]   ;;  %s822_s19 = scalar_lea.sflag [#allocation4], %s1585_s16 }
  0x70   : > { %1005 = vmatpush3.bf16.msra.mxu0 %v1176_v5  ;;  %v355_v30 = vpack.c.bf16 %v351_v29, %v349_v28  ;;  %v1190_v31 = vld [vmem:[#allocation7 + $0x20] sm:$0xff]   ;;  %v1193_v34 = vld [vmem:[#allocation7 + $0x8] sm:$0xff]   ;;  %v1195_v36 = vld [vmem:[#allocation8 + $0x38] sm:$0xff]   ;;  %p1335_p9 = pnand %p1334_p7, %p1328_p0 }
  0x71   : > { %1006 = vmatprep.subr.bf16.mxu0 %v1177_v6  ;;  %v1194_v35 = vld [vmem:[#allocation7] sm:$0xff]   ;;  %v1196_v37 = vld [vmem:[#allocation8 + $0x30] sm:$0xff]   ;;  %v1197_v38 = vld [vmem:[#allocation8 + $0x28] sm:$0xff]  }
  0x72   : > { %1051 = vmatpush3.bf16.msra.mxu1 %v1188_v17  ;;  %v1198_v39 = vld [vmem:[#allocation8 + $0x20] sm:$0xff]   ;;  %v1199_v40 = vld [vmem:[#allocation8 + $0x18] sm:$0xff]   ;;  %v1200_v0 = vld [vmem:[#allocation8 + $0x10] sm:$0xff]  }
  0x73   : > { %1052 = vmatprep.subr.bf16.mxu1 %v1189_v19  ;;  %v953_v45 = vld [vmem:[%s1672_s2] ss:$0 sm:$0xff]  ;;  %v1201_v1 = vld [vmem:[#allocation8 + $0x8] sm:$0xff]  }
  0x74   : > { %1007 = vmatpush3.bf16.msra.mxu0 %v1178_v7  ;;  %v1202_v2 = vld [vmem:[#allocation8] sm:$0xff]  }
  0x75   : > { %1008 = vmatprep.subr.bf16.mxu0 %v1179_v8  ;;  %v970_v5 = vld [vmem:[%s1674_s4] ss:$0 sm:$0xff] }
  0x76   : > { %1053 = vmatpush3.bf16.msra.mxu1 %v1189_v19 }
  0x77   : > { %1054 = vmatprep.subr.bf16.mxu1 %v1190_v31 }
  0x78   : > { %1009 = vmatpush3.bf16.msra.mxu0 %v1180_v9 }
  0x79   : > { %1010 = vmatprep.subr.bf16.mxu0 %v1181_v10 }
  0x7a   : > { %1055 = vmatpush3.bf16.msra.mxu1 %v1190_v31 }
  0x7b   : > { %1056 = vmatprep.subr.bf16.mxu1 %v1191_v32 }
  0x7c   : > { %1011 = vmatpush3.bf16.msra.mxu0 %v1182_v14 }
  0x7d   : > { %1012 = vmatprep.subr.bf16.mxu0 %v1183_v15 }
  0x7e   : > { %1057 = vmatpush3.bf16.msra.mxu1 %v1191_v32 }
  0x7f   : > { %1058 = vmatprep.subr.bf16.mxu1 %v1192_v33 }
  0x80   : > { %1013 = vmatpush3.bf16.msra.mxu0 %v1184_v18  ;;  %v979_v18 = vld [vmem:[%s1676_s6] ss:$0 sm:$0xff] }
  0x81   : > { %1014 = vmatprep.subr.bf16.mxu0 %v1185_v20 }
  0x82   : > { %1059 = vmatpush3.bf16.msra.mxu1 %v1192_v33 }
  0x83   : > { %1060 = vmatprep.subr.bf16.mxu1 %v1193_v34 }
  0x84   : > { %1015 = vmatpush3.bf16.msra.mxu0 %v1186_v21 }
  0x85   : > { %1068 = vmatprep.subr.bf16.mxu0 %v1195_v36 }
  0x86   : > { %1061 = vmatpush3.bf16.msra.mxu1 %v1193_v34 }
  0x87   : > { %525 = vmatmul.mubr.bf16.vlgmr.msra.gmra.mxu0 %v353_v26  ;;  %1062 = vmatprep.subr.bf16.mxu1 %v1194_v35 }
  0x88   : > { %532 = vmatprep.mubr.bf16.mxu0 %v356_v27  ;;  %1069 = vmatpush3.bf16.msra.mxu0 %v1195_v36 }
  0x89   : > { %1070 = vmatprep.subr.bf16.mxu0 %v1196_v37 }
  0x8a   : > { %1063 = vmatpush3.bf16.msra.mxu1 %v1194_v35 }
  0x8c   : > { %1071 = vmatpush3.bf16.msra.mxu0 %v1196_v37 }
  0x8d   : > { %1072 = vmatprep.subr.bf16.mxu0 %v1197_v38 }
  0x8f   : > { %533 = vmatmul.mubr.bf16.gmra.mxu0 %v355_v30 }
  0x90   : > { %1073 = vmatpush3.bf16.msra.mxu0 %v1197_v38 }
  0x91   : > { %1074 = vmatprep.subr.bf16.mxu0 %v1198_v39 }
  0x94   : > { %1075 = vmatpush3.bf16.msra.mxu0 %v1198_v39 }
  0x95   : > { %1076 = vmatprep.subr.bf16.mxu0 %v1199_v40 }
  0x98   : > { %1077 = vmatpush3.bf16.msra.mxu0 %v1199_v40 }
  0x99   : > { %1078 = vmatprep.subr.bf16.mxu0 %v1200_v0 }
  0x9c   : > { %1079 = vmatpush3.bf16.msra.mxu0 %v1200_v0 }
  0x9d   : > { %1080 = vmatprep.subr.bf16.mxu0 %v1201_v1 }
  0xa0   : > { %1081 = vmatpush3.bf16.msra.mxu0 %v1201_v1 }
  0xa1   : > { %1082 = vmatprep.subr.bf16.mxu0 %v1202_v2 }
  0xa4   : > { %1083 = vmatpush3.bf16.msra.mxu0 %v1202_v2 }
 0x147   : > { %v1016_v41 = vpop.f32.mrf.mxu0 }
 0x149   : > { %v1017_v42 = vpop.f32.mrf.mxu0 }
 0x14a   : > { %v1018_v43 = vadd.f32 %v1017_v42, %v1016_v41 }
 0x14b   : > { %v1019_v44 = vpop.f32.mrf.mxu0 }
 0x14c   : > { %v527_v48 = vadd.f32 %v1018_v43, %v953_v45 }
 0x14d   : > { %v1020_v46 = vpop.f32.mrf.mxu0 }
 0x14e   : > { %v1021_v47 = vadd.f32 %v1020_v46, %v1019_v44  ;;  %v541_v53 = vmax.f32 %v527_v48, 0.0 }
 0x14f   : > { %v1022_v49 = vpop.f32.mrf.mxu0 }
 0x150   : > { %v530_v50 = vadd.f32 %v1021_v47, %v953_v45 }
 0x151   : > { %v1023_v51 = vpop.f32.mrf.mxu0 }
 0x152   : > { %v1024_v52 = vadd.f32 %v1023_v51, %v1022_v49  ;;  %v542_v54 = vmax.f32 %v530_v50, 0.0 }
 0x153   : > { %v1025_v55 = vpop.f32.mrf.mxu0 }
 0x154   : > { %v545_v56 = vpack.c.bf16 %v542_v54, %v541_v53  ;;  %v535_v58 = vadd.f32 %v1024_v52, %v953_v45 }
 0x155   : > { %v1026_v57 = vpop.f32.mrf.mxu0 }
 0x156   : > { %v1027_v59 = vadd.f32 %v1026_v57, %v1025_v55  ;;  %1064 = vmatprep.mubr.bf16.mxu1 %v545_v56  ;;  %v543_v61 = vmax.f32 %v535_v58, 0.0 }
 0x158   : > { %v538_v60 = vadd.f32 %v1027_v59, %v953_v45 }
 0x15a   : > { %v544_v62 = vmax.f32 %v538_v60, 0.0 }
 0x15c   : > { %v546_v63 = vpack.c.bf16 %v544_v62, %v543_v61 }
 0x15e   : > { %1065 = vmatmul.mubr.bf16.vlgmr.msra.gmra.mxu1 %v546_v63 }
 0x21e   : > { %v1066_v3 = vpop.f32.mrf.mxu1 }
 0x21f   : > { %v661_v9 = vadd.f32 %v1066_v3, %v970_v5 }
 0x220   : > { %v652_v4 = vpop.f32.mrf.mxu1 }
 0x221   : > { %v653_v7 = vadd.f32 %v970_v5, %v652_v4  ;;  %v669_v15 = vmax.f32 %v661_v9, 0.0 }
 0x222   : > { %v1067_v6 = vpop.f32.mrf.mxu1 }
 0x223   : > { %v664_v8 = vadd.f32 %v1067_v6, %v970_v5  ;;  %v667_v13 = vmax.f32 %v653_v7, 0.0 }
 0x224   : > { %v655_v10 = vpop.f32.mrf.mxu1 }
 0x225   : > { %v656_v11 = vadd.f32 %v970_v5, %v655_v10  ;;  %v670_v12 = vmax.f32 %v664_v8, 0.0 }
 0x227   : > { %v668_v14 = vmax.f32 %v656_v11, 0.0  ;;  %v672_v17 = vpack.c.bf16 %v670_v12, %v669_v15 }
 0x229   : > { %v671_v16 = vpack.c.bf16 %v668_v14, %v667_v13 }
 0x22b   : > { %1084 = vmatprep.mubr.bf16.mxu0 %v671_v16 }
 0x22c   : > { %1085 = vmatmul.mubr.bf16.vlgmr.msra.gmra.mxu0 %v672_v17 }
 0x2ec   : > { %v1086_v19 = vpop.f32.mrf.mxu0 }
 0x2ed   : > { %v787_v20 = vadd.f32 %v1086_v19, %v979_v18 }
 0x2ee   : > { %v778_v21 = vpop.f32.mrf.mxu0 }
 0x2ef   : > { %v990_v22 = vmul.f32 -1.442695, %v787_v20  ;;  %v779_v23 = vadd.f32 %v979_v18, %v778_v21 }
 0x2f0   : > { %v1087_v24 = vpop.f32.mrf.mxu0 }
 0x2f1   : > { %1203 = vpow2.f32 %v990_v22  ;;  %v988_v25 = vmul.f32 -1.442695, %v779_v23  ;;  %v790_v26 = vadd.f32 %v1087_v24, %v979_v18 }
 0x2f2   : > { %v781_v27 = vpop.f32.mrf.mxu0 }
 0x2f3   : > { %1205 = vpow2.f32 %v988_v25  ;;  %v991_v28 = vmul.f32 -1.442695, %v790_v26  ;;  %v782_v29 = vadd.f32 %v979_v18, %v781_v27 }
 0x2f5   : > { %1207 = vpow2.f32 %v991_v28  ;;  %v989_v30 = vmul.f32 -1.442695, %v782_v29 }
 0x2f7   : > { %1209 = vpow2.f32 %v989_v30 }
 0x2fe   : > { %v1204_v31 = vpop.eup %1203 }
 0x2ff   : > { %v807_v32 = vadd.f32 1.0, %v1204_v31 }
 0x300   : > { %v1206_v33 = vpop.eup %1205 }
 0x301   : > { %1211 = vrcp.f32 %v807_v32  ;;  %v805_v34 = vadd.f32 1.0, %v1206_v33 }
 0x302   : > { %v1208_v35 = vpop.eup %1207 }
 0x303   : > { %1213 = vrcp.f32 %v805_v34  ;;  %v808_v36 = vadd.f32 1.0, %v1208_v35 }
 0x304   : > { %v1210_v37 = vpop.eup %1209 }
 0x305   : > { %1215 = vrcp.f32 %v808_v36  ;;  %v806_v38 = vadd.f32 1.0, %v1210_v37 }
 0x307   : > { %1217 = vrcp.f32 %v806_v38 }
 0x30e   : > { %v1212_v39 = vpop.eup %1211 }
 0x30f   : > { %819 = vst [vmem:[%s341_s29 + $0x10] sm:$0xff] %v1212_v39 }
 0x310   : > { %v1214_v40 = vpop.eup %1213 }
 0x311   : > { %817 = vst [vmem:[%s341_s29] sm:$0xff] %v1214_v40 }
 0x312   : > { %v1216_v41 = vpop.eup %1215 }
 0x313   : > { %820 = vst [vmem:[%s341_s29 + $0x18] sm:$0xff] %v1216_v41 }
 0x314   : > { %v1218_v42 = vpop.eup %1217 }
 0x315   : > { %818 = vst [vmem:[%s341_s29 + $0x8] sm:$0xff] %v1218_v42 }
 0x316   : > { %1338 = shalt.err (!%p1335_p9)
}
 0x317   : > { %s1339_s10 = scalar_lea.hbm %s1625_s18, 512  ;;  %s1343_s21 = scalar_lea.hbm %s1677_s7, 1024 }
 0x318   : > { %p1340_p1 = scmp.ne.s32.totalorder %s1625_s18, %s1339_s10  ;;  %p1344_p11 = scmp.lt.s32.totalorder %s1625_s18, %s1677_s7 }
 0x319   : > { %p1345_p13 = scmp.lt.s32.totalorder %s1343_s21, %s1339_s10 }
 0x31a   : > { %p1341_p8 = pnand %p1340_p1, %p1697_p6 }
 0x31b   : > { %p1346_p2 = por %p1345_p13, %p1344_p11 }
 0x31c   : > { %p1342_p10 = pneg %p1341_p8 }
 0x31e   : > { %p1347_p4 = pnand %p1346_p2, %p1342_p10 }
 0x320   : > { %1350 = shalt.err (!%p1347_p4)
}
 0x321   : > { %s1408_s22 = smov 128   ;;  %s1409_s1 = smov 8  }
 0x322   : > { %1102 = dma.vmem_to_hbm [thread:$0]  (%p1697_p6), %s1627_s15, 512, %s1625_s18, %s822_s19, %s1408_s22, %s1408_s22, %s1409_s1  }
 0x323 PF: > { %s850_s30 = sand.u32 1, %s1385_s24   ;;  %p1698_p12 = scmp.ne.s32.totalorder %s1684_s8, 0 }
 0x324   : > { %p1699_p0 = scmp.ge.s32.totalorder %s1397_s27, 2  ;;  %s851_s28 = scalar_lea.sflag [#allocation4], %s850_s30 }
 0x326   : > { %p1119_p5 = pnand %p1699_p0, %p1698_p12 }
 0x328   : > { %p1120_p3 = pneg %p1119_p5 }
 0x32a   : > { %1380 = dma.done.wait (%p1120_p3), %s851_s28, 512  }
 0x32b   : > { %1382 = vsyncadd (%p1120_p3), %s851_s28, 4294966784  ;;  %p22_p7 = scmp.ge.s32.totalorder %s1530_s14, 4   ;;  %s1700_s24 = smov %s1389_s25 }
 0x32c   : > { %s1701_s25 = smov %s1393_s26  ;;  %s1702_s26 = smov %s1540_s17 }
 0x32d   : > { %s1703_s27 = smov %s1530_s14  ;;  %24 = sbr.rel (!%p22_p7) target bundleno = 9 (0x9), region = 105 }
 0x332   :  { %856 = vsyncpa [#allocation3], 1 }
 0x333   :  { %858 = vsyncpa [#allocation3 + $0x1], 1 }
 0x334   :  { %859 = vsyncpa [#allocation6], 1 }
 0x335   :  { %860 = vsyncpa [#allocation9], 1 }
 0x336   :  { %861 = vsyncpa [#allocation4], 1 }
 0x337   :  { %863 = vsyncpa [#allocation4 + $0x1], 1 }

</bundles_post_ra>
